<compile_context>
chip_gen: v7x
topology: tpu7x:2x2x1
jax: 0.10.0
libtpu: 0.0.40
codegen_flags: <defaults>
</compile_context>

<pallas_src>
import math

import jax
import jax.numpy as jnp
from jax.experimental import pallas as pl
from jax.experimental.pallas import tpu as pltpu


def ffn_kernel(x_ref, w1_ref, b1_ref, w2_ref, b2_ref, o_ref, acc_ref):
    """One (m_tile, h_tile) grid step of the fused feed-forward block.

    x_ref  : (tm, E)   token tile
    w1_ref : (E, th)   first-projection weight chunk, already (in, out)
    b1_ref : (1, th)   first-projection bias chunk
    w2_ref : (th, E)   second-projection weight chunk, already (in, out)
    b2_ref : (1, E)    second-projection bias
    o_ref  : (tm, E)   output tile (resident across the hidden axis)
    acc_ref: (tm, E)   f32 accumulator scratch
    """
    h_idx = pl.program_id(1)

    @pl.when(h_idx == 0)
    def _():
        acc_ref[...] = jnp.zeros_like(acc_ref)

    # First projection chunk: (tm, E) @ (E, th) -> (tm, th). No transpose:
    # weights were pre-transposed on the host.
    h = jnp.dot(x_ref[...], w1_ref[...],
                preferred_element_type=jnp.float32) + b1_ref[...]

    # ELU (alpha = 1):  x if x > 0 else exp(x) - 1.  The exp goes to the EUP
    # slot; min() keeps the unselected branch from overflowing.
    h_neg = jnp.exp(jnp.minimum(h, 0.0)) - 1.0
    h = jnp.where(h > 0, h, h_neg)

    # Dropout is identity in eval mode.
    # TODO(synk): training-mode dropout (stateful PRNG mask) not implemented.

    # Second projection chunk, accumulated over hidden tiles:
    # (tm, th) @ (th, E) -> (tm, E)
    acc_ref[...] += jnp.dot(h.astype(w2_ref.dtype), w2_ref[...],
                            preferred_element_type=jnp.float32)

    @pl.when(h_idx == pl.num_programs(1) - 1)
    def _():
        o_ref[...] = (acc_ref[...] + b2_ref[...]).astype(o_ref.dtype)


def _pick_tile(dim, pref, align):
    """Largest tile <= pref that divides `dim` and is a multiple of `align`;
    falls back to the full dim (always legal for BlockSpec)."""
    if dim % align == 0:
        t = min(pref, dim)
        t -= t % align
        while t >= align:
            if dim % t == 0:
                return t
            t -= align
    return dim


def feed_forward_block(x, params):
    """x: (..., E) float32.  params: PyTorch-convention weights:
         w1: (H, E), b1: (H,), w2: (E, H), b2: (E,)   with H = expansion*E.
    """
    E = x.shape[-1]
    H = params["w1"].shape[0]

    # Host-side layout prep (zero cost inside the kernel):
    #   pre-transpose weights to (in, out); biases as 2-D rows.
    w1t = jnp.asarray(params["w1"]).T            # (E, H)
    w2t = jnp.asarray(params["w2"]).T            # (H, E)
    b1 = jnp.asarray(params["b1"]).reshape(1, H)
    b2 = jnp.asarray(params["b2"]).reshape(1, E)

    orig_shape = x.shape
    M = math.prod(orig_shape[:-1])
    x2 = x.reshape(M, E)

    # Tile sizes: rows aligned to sublanes (8), hidden chunks aligned to
    # lanes (128) when possible; otherwise full extent.
    tm = _pick_tile(M, 256, 8)
    th = _pick_tile(H, 512, 128)

    grid = (M // tm, H // th)

    out = pl.pallas_call(
        ffn_kernel,
        out_shape=jax.ShapeDtypeStruct((M, E), x.dtype),
        grid_spec=pltpu.PrefetchScalarGridSpec(
            num_scalar_prefetch=0,
            grid=grid,
            in_specs=[
                pl.BlockSpec((tm, E), lambda m, h: (m, 0)),   # x tile
                pl.BlockSpec((E, th), lambda m, h: (0, h)),   # W1 chunk
                pl.BlockSpec((1, th), lambda m, h: (0, h)),   # b1 chunk
                pl.BlockSpec((th, E), lambda m, h: (h, 0)),   # W2 chunk
                pl.BlockSpec((1, E), lambda m, h: (0, 0)),    # b2
            ],
            out_specs=pl.BlockSpec((tm, E), lambda m, h: (m, 0)),
            scratch_shapes=[pltpu.VMEM((tm, E), jnp.float32)],
        ),
        compiler_params=pltpu.CompilerParams(
            dimension_semantics=("parallel", "arbitrary"),
            vmem_limit_bytes=64 * 1024 * 1024,
        ),
    )(x2, w1t, b1, w2t, b2)

    return out.reshape(orig_shape)


def _reference(x, params):
    """Pure-JAX reference mirroring the PyTorch forward (eval mode)."""
    h = jnp.einsum('...e,he->...h', x, params["w1"]) + params["b1"]
    h = jnp.where(h > 0, h, jnp.exp(jnp.minimum(h, 0.0)) - 1.0)   # ELU, alpha=1
    return jnp.einsum('...h,eh->...e', h, params["w2"]) + params["b2"]


if __name__ == "__main__":
    # Small shapes consistent with the module: batch=2, seq=8, emb=32, expansion=2
    B, N, E, EXPANSION = 2, 8, 32, 2
    H = EXPANSION * E

    key = jax.random.PRNGKey(0)
    ks = jax.random.split(key, 5)

    # Deterministic parameter init (PyTorch nn.Linear default uniform scale).
    def u(k, shape, fan_in):
        bound = 1.0 / math.sqrt(fan_in)
        return jax.random.uniform(k, shape, jnp.float32, -bound, bound)

    params = {
        "w1": u(ks[0], (H, E), E), "b1": u(ks[1], (H,), E),
        "w2": u(ks[2], (E, H), H), "b2": u(ks[3], (E,), H),
    }
    x = jax.random.normal(ks[4], (B, N, E), jnp.float32)

    out = feed_forward_block(x, params)
    out = jax.block_until_ready(out)

    ref = _reference(x, params)
    assert out.shape == (B, N, E)
    assert jnp.allclose(out, ref, atol=1e-5, rtol=1e-5), "mismatch vs reference"

    print("KERNEL_OK")
</pallas_src>

<mosaic_0001>
module attributes {stable_mosaic.version = 11 : i64} {
  func.func @ffn_kernel(%arg0: i32, %arg1: i32, %arg2: memref<16x32xf32, #tpu.memory_space<vmem>>, %arg3: memref<32x64xf32, #tpu.memory_space<vmem>>, %arg4: memref<1x64xf32, #tpu.memory_space<vmem>>, %arg5: memref<64x32xf32, #tpu.memory_space<vmem>>, %arg6: memref<1x32xf32, #tpu.memory_space<vmem>>, %arg7: memref<16x32xf32, #tpu.memory_space<vmem>>, %arg8: memref<16x32xf32, #tpu.memory_space<vmem>>) attributes {dimension_semantics = [#tpu.dimension_semantics<parallel>, #tpu.dimension_semantics<arbitrary>], iteration_bounds = array<i64: 1, 1>, scalar_prefetch = 0 : i64, scratch_operands = 1 : i64, tpu.core_type = #tpu.core_type<tc>, window_params = [{transform_indices = @transform_0, window_bounds = array<i64: 16, 32>}, {transform_indices = @transform_1, window_bounds = array<i64: 32, 64>}, {transform_indices = @transform_2, window_bounds = array<i64: 1, 64>}, {transform_indices = @transform_3, window_bounds = array<i64: 64, 32>}, {pipeline_mode = #tpu.pipeline_mode<synchronous>, transform_indices = @transform_4, window_bounds = array<i64: 1, 32>}, {transform_indices = @transform_5, window_bounds = array<i64: 16, 32>}]} {
    %c0_i32 = arith.constant 0 : i32
    %0 = arith.cmpi eq, %arg1, %c0_i32 : i32
    %1 = arith.extui %0 : i1 to i32
    %c0_i32_0 = arith.constant 0 : i32
    %2 = arith.cmpi ne, %1, %c0_i32_0 : i32
    scf.if %2 {
      %cst_18 = arith.constant 0.000000e+00 : f32
      %25 = vector.broadcast %cst_18 : f32 to vector<16x32xf32>
      %c0_19 = arith.constant 0 : index
      %c0_20 = arith.constant 0 : index
      %26 = vector.load %arg8[%c0_19, %c0_20] : memref<16x32xf32, #tpu.memory_space<vmem>>, vector<16x32xf32>
      tpu.vector_store %arg8[%c0_19, %c0_20], %25 {strides = array<i32>} : memref<16x32xf32, #tpu.memory_space<vmem>>, vector<16x32xf32>,
    } else {
    }
    %c0 = arith.constant 0 : index
    %c0_1 = arith.constant 0 : index
    %3 = vector.load %arg2[%c0, %c0_1] : memref<16x32xf32, #tpu.memory_space<vmem>>, vector<16x32xf32>
    %c0_2 = arith.constant 0 : index
    %c0_3 = arith.constant 0 : index
    %4 = vector.load %arg3[%c0_2, %c0_3] : memref<32x64xf32, #tpu.memory_space<vmem>>, vector<32x64xf32>
    %cst = arith.constant dense<0.000000e+00> : vector<16x64xf32>
    %5 = tpu.matmul %3, %4, %cst {dimension_numbers = #tpu.dot_dimension_numbers<[1], [0], [0], [1], [0, 0, 1, 1], [], []>} : vector<16x32xf32>, vector<32x64xf32>, vector<16x64xf32> -> vector<16x64xf32>
    %c0_4 = arith.constant 0 : index
    %c0_5 = arith.constant 0 : index
    %6 = vector.load %arg4[%c0_4, %c0_5] : memref<1x64xf32, #tpu.memory_space<vmem>>, vector<1x64xf32>
    %7 = vector.broadcast %6 : vector<1x64xf32> to vector<16x64xf32>
    %8 = arith.addf %5, %7 : vector<16x64xf32>
    %cst_6 = arith.constant 0.000000e+00 : f32
    %9 = vector.broadcast %cst_6 : f32 to vector<16x64xf32>
    %10 = arith.minimumf %8, %9 : vector<16x64xf32>
    %11 = math.exp %10 : vector<16x64xf32>
    %cst_7 = arith.constant 1.000000e+00 : f32
    %12 = vector.broadcast %cst_7 : f32 to vector<16x64xf32>
    %13 = arith.subf %11, %12 : vector<16x64xf32>
    %cst_8 = arith.constant 0.000000e+00 : f32
    %14 = vector.broadcast %cst_8 : f32 to vector<16x64xf32>
    %15 = arith.cmpf ogt, %8, %14 : vector<16x64xf32>
    %16 = arith.select %15, %8, %13 : vector<16x64xi1>, vector<16x64xf32>
    %c0_9 = arith.constant 0 : index
    %c0_10 = arith.constant 0 : index
    %17 = vector.load %arg8[%c0_9, %c0_10] : memref<16x32xf32, #tpu.memory_space<vmem>>, vector<16x32xf32>
    %c0_11 = arith.constant 0 : index
    %c0_12 = arith.constant 0 : index
    %18 = vector.load %arg5[%c0_11, %c0_12] : memref<64x32xf32, #tpu.memory_space<vmem>>, vector<64x32xf32>
    %cst_13 = arith.constant dense<0.000000e+00> : vector<16x32xf32>
    %19 = tpu.matmul %16, %18, %cst_13 {dimension_numbers = #tpu.dot_dimension_numbers<[1], [0], [0], [1], [0, 0, 1, 1], [], []>} : vector<16x64xf32>, vector<64x32xf32>, vector<16x32xf32> -> vector<16x32xf32>
    %20 = arith.addf %17, %19 : vector<16x32xf32>
    %c0_14 = arith.constant 0 : index
    %c0_15 = arith.constant 0 : index
    %21 = vector.load %arg8[%c0_14, %c0_15] : memref<16x32xf32, #tpu.memory_space<vmem>>, vector<16x32xf32>
    tpu.vector_store %arg8[%c0_14, %c0_15], %20 {strides = array<i32>} : memref<16x32xf32, #tpu.memory_space<vmem>>, vector<16x32xf32>,
    %c0_i32_16 = arith.constant 0 : i32
    %22 = arith.cmpi eq, %arg1, %c0_i32_16 : i32
    %23 = arith.extui %22 : i1 to i32
    %c0_i32_17 = arith.constant 0 : i32
    %24 = arith.cmpi ne, %23, %c0_i32_17 : i32
    scf.if %24 {
      %c0_18 = arith.constant 0 : index
      %c0_19 = arith.constant 0 : index
      %25 = vector.load %arg8[%c0_18, %c0_19] : memref<16x32xf32, #tpu.memory_space<vmem>>, vector<16x32xf32>
      %c0_20 = arith.constant 0 : index
      %c0_21 = arith.constant 0 : index
      %26 = vector.load %arg6[%c0_20, %c0_21] : memref<1x32xf32, #tpu.memory_space<vmem>>, vector<1x32xf32>
      %27 = vector.broadcast %26 : vector<1x32xf32> to vector<16x32xf32>
      %28 = arith.addf %25, %27 : vector<16x32xf32>
      %c0_22 = arith.constant 0 : index
      %c0_23 = arith.constant 0 : index
      %29 = vector.load %arg7[%c0_22, %c0_23] : memref<16x32xf32, #tpu.memory_space<vmem>>, vector<16x32xf32>
      tpu.vector_store %arg7[%c0_22, %c0_23], %28 {strides = array<i32>} : memref<16x32xf32, #tpu.memory_space<vmem>>, vector<16x32xf32>,
    } else {
    }
    return
  }
  func.func @transform_0(%arg0: i32, %arg1: i32) -> (i32, i32) {
    %c0_i32 = arith.constant 0 : i32
    %c0_i32_0 = arith.constant 0 : i32
    return %arg0, %c0_i32 : i32, i32
  }
  func.func @transform_1(%arg0: i32, %arg1: i32) -> (i32, i32) {
    %c0_i32 = arith.constant 0 : i32
    %c0_i32_0 = arith.constant 0 : i32
    return %c0_i32, %arg1 : i32, i32
  }
  func.func @transform_2(%arg0: i32, %arg1: i32) -> (i32, i32) {
    %c0_i32 = arith.constant 0 : i32
    %c0_i32_0 = arith.constant 0 : i32
    return %c0_i32, %arg1 : i32, i32
  }
  func.func @transform_3(%arg0: i32, %arg1: i32) -> (i32, i32) {
    %c0_i32 = arith.constant 0 : i32
    %c0_i32_0 = arith.constant 0 : i32
    return %arg1, %c0_i32 : i32, i32
  }
  func.func @transform_4(%arg0: i32, %arg1: i32) -> (i32, i32) {
    %c0_i32 = arith.constant 0 : i32
    %c0_i32_0 = arith.constant 0 : i32
    %c0_i32_1 = arith.constant 0 : i32
    return %c0_i32, %c0_i32_0 : i32, i32
  }
  func.func @transform_5(%arg0: i32, %arg1: i32) -> (i32, i32) {
    %c0_i32 = arith.constant 0 : i32
    %c0_i32_0 = arith.constant 0 : i32
    return %arg0, %c0_i32 : i32, i32
  }
}

</mosaic_0001>

<bundles_post_ra>
// kernel: tpu_custom_call.1
= control target key start
LH: loop header
LB: loop body
LE: loop exit
PB: predicated region body
PF: predicated region fallthrough
CT: control target
= control target key end

     0   :  { %10 = vsyncpa [#allocation4], 0  ;;  %s699_s0 = inlined_call_operand.hbm [shape: f32[16,32], index: 0, kind: input, shape index: {}]   ;;  %s700_s1 = inlined_call_operand.hbm [shape: f32[32,64], index: 1, kind: input, shape index: {}]   ;;  %s701_s2 = inlined_call_operand.hbm [shape: f32[1,64], index: 2, kind: input, shape index: {}]   ;;  %s702_s3 = inlined_call_operand.hbm [shape: f32[64,32], index: 3, kind: input, shape index: {}]   ;;  %s703_s4 = inlined_call_operand.hbm [shape: f32[1,32], index: 4, kind: input, shape index: {}]   ;;  %s704_s5 = inlined_call_operand.hbm [shape: f32[16,32], index: 5, kind: output, shape index: {}]  }
   0x1   :  { %11 = vsyncpa [#allocation7], 0 }
   0x2   :  { %12 = vsyncpa [#allocation10], 0 }
   0x3   :  { %13 = vsyncpa [#allocation5], 0  ;;  %s561_s18 = smov [#allocation6]   ;;  %s562_s20 = smov [#allocation9]  }
   0x4   :  { %s31_s19 = sshll.u32 %s561_s18, 4  ;;  %s53_s21 = sshll.u32 %s562_s20, 4  ;;  %s32_s19 = int_to_ptr.vmem [resolvable:$true] %s31_s19  ;;  %s600_s21 = int_to_ptr.vmem [resolvable:$true] %s53_s21 }
   0x5   :  { %s421_s24 = scalar_lea.hbm %s700_s1, 512 }
   0x6   :  { %p422_p0 = scmp.ne.s32.totalorder %s700_s1, %s421_s24  ;;  %p425_p1 = scmp.lt.u32.totalorder %s421_s24, %s700_s1 }
   0x8   :  { %p427_p2 = pnand %p425_p1, %p422_p0 }
   0xa   :  { %430 = shalt.err (!%p427_p2)
}
   0xb   :  { %s431_s29 = scalar_lea.vmem %s32_s19, 512  ;;  %p436_p4 = scmp.lt.s32.totalorder %s32_s19, %s32_s19 }
   0xc   :  { %p432_p3 = scmp.ne.s32.totalorder %s32_s19, %s431_s29  ;;  %p437_p5 = scmp.lt.s32.totalorder %s431_s29, %s431_s29 }
   0xe   :  { %p438_p6 = por %p437_p5, %p436_p4 }
  0x10   :  { %p439_p7 = pnand %p438_p6, %p432_p3 }
  0x12   :  { %442 = shalt.err (!%p439_p7)
}
  0x13   :  { %s563_s30 = smov 128   ;;  %s564_s6 = smov 8  }
  0x14   :  { %37 = dma.hbm_to_vmem [thread:$0]  %s700_s1, 512, %s32_s19, [#allocation7], %s563_s30, %s563_s30, %s564_s6  }
  0x15   :  { %s443_s11 = scalar_lea.hbm %s702_s3, 1024 }
  0x16   :  { %p444_p8 = scmp.ne.s32.totalorder %s702_s3, %s443_s11  ;;  %p447_p9 = scmp.lt.u32.totalorder %s443_s11, %s702_s3 }
  0x18   :  { %p449_p10 = pnand %p447_p9, %p444_p8 }
  0x1a   :  { %452 = shalt.err (!%p449_p10)
}
  0x1b   :  { %s453_s16 = scalar_lea.vmem %s600_s21, 1024  ;;  %p458_p12 = scmp.lt.s32.totalorder %s600_s21, %s600_s21 }
  0x1c   :  { %p454_p11 = scmp.ne.s32.totalorder %s600_s21, %s453_s16  ;;  %p459_p13 = scmp.lt.s32.totalorder %s453_s16, %s453_s16 }
  0x1e   :  { %p460_p0 = por %p459_p13, %p458_p12 }
  0x20   :  { %p461_p1 = pnand %p460_p0, %p454_p11 }
  0x22   :  { %464 = shalt.err (!%p461_p1)
}
  0x23   :  { %59 = dma.hbm_to_vmem [thread:$0]  %s702_s3, 1024, %s600_s21, [#allocation10], %s563_s30, %s563_s30, %s564_s6  }
  0x24   :  { %s565_s18 = smov [#allocation3]   ;;  %s566_s20 = smov [#allocation8]  }
  0x25   :  { %s19_s19 = sshll.u32 %s565_s18, 4  ;;  %s44_s22 = sshll.u32 %s566_s20, 4  ;;  %s20_s19 = int_to_ptr.vmem [resolvable:$true] %s19_s19  ;;  %s45_s22 = int_to_ptr.vmem [resolvable:$true] %s44_s22 }
  0x26   :  { %s465_s25 = scalar_lea.hbm %s699_s0, 256 }
  0x27   :  { %p466_p2 = scmp.ne.s32.totalorder %s699_s0, %s465_s25  ;;  %p469_p3 = scmp.lt.u32.totalorder %s465_s25, %s699_s0 }
  0x29   :  { %p471_p4 = pnand %p469_p3, %p466_p2 }
  0x2b   :  { %474 = shalt.err (!%p471_p4)
}
  0x2c   :  { %s475_s3 = scalar_lea.vmem %s20_s19, 256  ;;  %p480_p6 = scmp.lt.s32.totalorder %s20_s19, %s20_s19 }
  0x2d   :  { %p476_p5 = scmp.ne.s32.totalorder %s20_s19, %s475_s3  ;;  %p481_p7 = scmp.lt.s32.totalorder %s475_s3, %s475_s3 }
  0x2f   :  { %p482_p8 = por %p481_p7, %p480_p6 }
  0x31   :  { %p483_p9 = pnand %p482_p8, %p476_p5 }
  0x33   :  { %486 = shalt.err (!%p483_p9)
}
  0x34   :  { %25 = dma.hbm_to_vmem [thread:$0]  %s699_s0, 256, %s20_s19, [#allocation4], %s563_s30, %s563_s30, %s564_s6  }
  0x35   :  { %s487_s10 = scalar_lea.hbm %s701_s2, 16 }
  0x36   :  { %p488_p10 = scmp.ne.s32.totalorder %s701_s2, %s487_s10  ;;  %p491_p11 = scmp.lt.u32.totalorder %s487_s10, %s701_s2 }
  0x38   :  { %p493_p12 = pnand %p491_p11, %p488_p10 }
  0x3a   :  { %496 = shalt.err (!%p493_p12)
}
  0x3b   :  { %s497_s15 = scalar_lea.vmem %s45_s22, 16  ;;  %s501_s16 = scalar_lea.vmem %s45_s22, 32 }
  0x3c   :  { %p498_p13 = scmp.ne.s32.totalorder %s45_s22, %s497_s15  ;;  %p502_p0 = scmp.lt.s32.totalorder %s45_s22, %s45_s22 }
  0x3d   :  { %p503_p1 = scmp.lt.s32.totalorder %s501_s16, %s497_s15 }
  0x3f   :  { %p504_p2 = por %p503_p1, %p502_p0 }
  0x41   :  { %p505_p3 = pnand %p504_p2, %p498_p13 }
  0x43   :  { %508 = shalt.err (!%p505_p3)
}
  0x44   :  { %47 = dma.hbm_to_vmem [thread:$0]  %s701_s2, 16, %s45_s22, [#allocation7]  }
  0x45   :  { %s567_s17 = smov [#allocation11]   ;;  %s509_s23 = scalar_lea.hbm %s703_s4, 16 }
  0x46   :  { %s66_s18 = sshll.u32 %s567_s17, 4  ;;  %p510_p4 = scmp.ne.s32.totalorder %s703_s4, %s509_s23  ;;  %s67_s18 = int_to_ptr.vmem [resolvable:$true] %s66_s18 }
  0x47   :  { %p513_p5 = scmp.lt.u32.totalorder %s509_s23, %s703_s4 }
  0x49   :  { %p515_p6 = pnand %p513_p5, %p510_p4 }
  0x4b   :  { %518 = shalt.err (!%p515_p6)
}
  0x4c   :  { %s519_s28 = scalar_lea.vmem %s67_s18, 16  ;;  %s523_s2 = scalar_lea.vmem %s67_s18, 32 }
  0x4d   :  { %p520_p7 = scmp.ne.s32.totalorder %s67_s18, %s519_s28  ;;  %p524_p8 = scmp.lt.s32.totalorder %s67_s18, %s67_s18 }
  0x4e   :  { %p525_p9 = scmp.lt.s32.totalorder %s523_s2, %s519_s28 }
  0x50   :  { %p526_p10 = por %p525_p9, %p524_p8 }
  0x52   :  { %p527_p11 = pnand %p526_p10, %p520_p7 }
  0x54   :  { %530 = shalt.err (!%p527_p11)
}
  0x55   :  { %69 = dma.hbm_to_vmem [thread:$0]  %s703_s4, 16, %s67_s18, [#allocation10]  }
  0x56   :  { %553 = dma.done.wait [#allocation4], 256  }
  0x57   :  { %554 = vsyncadd [#allocation4], 4294967040 }
  0x58   :  { %555 = dma.done.wait [#allocation7], 528  }
  0x59   :  { %556 = vsyncadd [#allocation7], 4294966768 }
  0x5a   :  { %557 = dma.done.wait [#allocation10], 1040  }
  0x5b   :  { %558 = vsyncadd [#allocation10], 4294966256  ;;  %vm89_vm0 = vcmask 261120   ;;  %v94_v0 = vld [vmem:[#allocation6] sm:$0xff]  ;;  %v95_v1 = vld [vmem:[#allocation6 + $0x8] sm:$0xff]  ;;  %v568_v20 = vmov 0.0  }
  0x5c   :  { %v96_v2 = vld [vmem:[#allocation6 + $0x10] sm:$0xff]  ;;  %v384_v3 = vpack.c.bf16 %v95_v1, %v94_v0  ;;  %v97_v4 = vld [vmem:[#allocation6 + $0x18] sm:$0xff]  ;;  %v201_v8 = vld [vmem:[#allocation9] sm:$0xff]  ;;  %91 = vst.msk [vmem:[#allocation2 + $0x8] sm:$0xff] %vm89_vm0, %v568_v20  ;;  %vm209_vm1 = vcmask 523264   ;;  %s569_s4 = smov [#allocation12]  }
  0x5d   :  { %v92_v5 = vld [vmem:[#allocation3] sm:$0xff]  ;;  %v388_v6 = vpack.c.bf16 %v97_v4, %v96_v2  ;;  %v93_v7 = vld [vmem:[#allocation3 + $0x8] sm:$0xff]  ;;  %v205_v13 = vld [vmem:[#allocation9 + $0x20] sm:$0xff]  ;;  %90 = vst.msk [vmem:[#allocation2] sm:$0xff] %vm89_vm0, %v568_v20  ;;  %s316_s3 = sshll.u32 %s569_s4, 4  ;;  %s317_s3 = int_to_ptr.vmem [resolvable:$true] %s316_s3 }
  0x5e   :  { %362 = vmatprep.mubr.msk.f32.mxu0 %vm89_vm0, %v92_v5  ;;  %385 = vmatprep.subr.bf16.mxu0 %v384_v3  ;;  %v202_v9 = vld [vmem:[#allocation9 + $0x8] sm:$0xff]  ;;  %v203_v11 = vld [vmem:[#allocation9 + $0x10] sm:$0xff]  ;;  %v204_v12 = vld [vmem:[#allocation9 + $0x18] sm:$0xff]  ;;  %s531_s21 = scalar_lea.vmem %s317_s3, 256  ;;  %p536_p13 = scmp.lt.s32.totalorder %s317_s3, %s317_s3 }
  0x5f   :  { %387 = vmatpush3.bf16.msra.mxu0 %v384_v3  ;;  %v392_v10 = vpack.c.bf16 %v202_v9, %v201_v8  ;;  %v396_v14 = vpack.c.bf16 %v204_v12, %v203_v11  ;;  %v206_v15 = vld [vmem:[#allocation9 + $0x28] sm:$0xff]  ;;  %v207_v17 = vld [vmem:[#allocation9 + $0x30] sm:$0xff]  ;;  %v208_v18 = vld [vmem:[#allocation9 + $0x38] sm:$0xff]  ;;  %p532_p12 = scmp.ne.s32.totalorder %s317_s3, %s531_s21  ;;  %p537_p0 = scmp.lt.s32.totalorder %s531_s21, %s531_s21 }
  0x60   :  { %389 = vmatprep.subr.bf16.mxu0 %v388_v6  ;;  %v400_v16 = vpack.c.bf16 %v206_v15, %v205_v13  ;;  %v404_v19 = vpack.c.bf16 %v208_v18, %v207_v17  ;;  %v330_v21 = vld [vmem:[#allocation8] ss:$0 sm:$0xff]  ;;  %v337_v42 = vld [vmem:[#allocation11] ss:$0 sm:$0xff] }
  0x61   :  { %393 = vmatprep.subr.bf16.mxu1 %v392_v10  ;;  %p538_p1 = por %p537_p0, %p536_p13 }
  0x62   :  { %395 = vmatpush3.bf16.msra.mxu1 %v392_v10 }
  0x63   :  { %391 = vmatpush3.bf16.msra.mxu0 %v388_v6  ;;  %397 = vmatprep.subr.bf16.mxu1 %v396_v14  ;;  %v200_v36 = vld [vmem:[#allocation2 + $0x8] sm:$0xff]  ;;  %p539_p2 = pnand %p538_p1, %p532_p12 }
  0x64   :  { %v199_v37 = vld [vmem:[#allocation2] sm:$0xff] }
  0x66   :  { %363 = vmatmul.mubr.msk.f32.vlgmr.msra.gmra.mrb[0].mxu0 %vm89_vm0, %v93_v7  ;;  %399 = vmatpush3.bf16.msra.mxu1 %v396_v14 }
  0x67   :  { %401 = vmatprep.subr.bf16.mxu1 %v400_v16 }
  0x6a   :  { %403 = vmatpush3.bf16.msra.mxu1 %v400_v16 }
  0x6b   :  { %405 = vmatprep.subr.bf16.mxu1 %v404_v19 }
  0x6e   :  { %407 = vmatpush3.bf16.msra.mxu1 %v404_v19 }
 0x139   :  { %v364_v22 = vpop.f32.mrb[0].mxu0 }
 0x13a   :  { %v184_v23 = vadd.f32 %v364_v22, %v330_v21  ;;  %v178_v24 = vpop.f32.mrb[1].mxu0 }
 0x13b   :  { %v179_v25 = vadd.f32 %v330_v21, %v178_v24 }
 0x13c   :  { %v188_v26 = vmin.f32 %v184_v23, 0.0  ;;  %vm196_vm3 = vcmp.gt.f32.partialorder %v184_v23, 0.0 }
 0x13d   :  { %v187_v27 = vmin.f32 %v179_v25, 0.0  ;;  %vm195_vm2 = vcmp.gt.f32.partialorder %v179_v25, 0.0 }
 0x13e   :  { %v191_v28 = vmul.f32 1.442695, %v188_v26 }
 0x13f   :  { %v189_v29 = vmul.f32 1.442695, %v187_v27 }
 0x140   :  { %417 = vpow2.f32 %v191_v28 }
 0x141   :  { %419 = vpow2.f32 %v189_v29 }
 0x14a   :  { %v418_v30 = vpop.eup %417 }
 0x14b   :  { %v420_v31 = vpop.eup %419  ;;  %v334_v32 = vadd.f32 -1.0, %v418_v30 }
 0x14c   :  { %v333_v33 = vadd.f32 -1.0, %v420_v31 }
 0x14d   :  { %v198_v35 = vsel %vm196_vm3, %v184_v23, %v334_v32 }
 0x14e   :  { %v197_v34 = vsel %vm195_vm2, %v179_v25, %v333_v33 }
 0x14f   :  { %381 = vmatprep.mubr.msk.f32.mxu1 %vm209_vm1, %v197_v34 }
 0x150   :  { %382 = vmatmul.mubr.msk.f32.vlgmr.msra.gmra.mrb[0].mxu1 %vm209_vm1, %v198_v35 }
 0x223   :  { %v383_v38 = vpop.f32.mrb[0].mxu1 }
 0x224   :  { %v292_v39 = vadd.f32 %v383_v38, %v200_v36  ;;  %v282_v40 = vpop.f32.mrb[1].mxu1 }
 0x225   :  { %v291_v41 = vadd.f32 %v282_v40, %v199_v37 }
 0x226   :  { %294 = vst.msk [vmem:[#allocation2 + $0x8] sm:$0xff] %vm89_vm0, %v292_v39 }
 0x227   :  { %293 = vst.msk [vmem:[#allocation2] sm:$0xff] %vm89_vm0, %v291_v41 }
 0x22d   :  { %v299_v43 = vld [vmem:[#allocation2 + $0x8] sm:$0xff] }
 0x22e   :  { %v298_v44 = vld [vmem:[#allocation2] sm:$0xff]  ;;  %v308_v45 = vadd.f32 %v337_v42, %v299_v43 }
 0x22f   :  { %v307_v46 = vadd.f32 %v337_v42, %v298_v44 }
 0x230   :  { %310 = vst.msk [vmem:[#allocation12 + $0x8] sm:$0xff] %vm89_vm0, %v308_v45 }
 0x231   :  { %309 = vst.msk [vmem:[#allocation12] sm:$0xff] %vm89_vm0, %v307_v46 }
 0x232   :  { %542 = shalt.err (!%p539_p2)
}
 0x233   :  { %s543_s9 = scalar_lea.hbm %s704_s5, 256 }
 0x234   :  { %p544_p3 = scmp.ne.s32.totalorder %s704_s5, %s543_s9  ;;  %p547_p4 = scmp.lt.u32.totalorder %s543_s9, %s704_s5 }
 0x236   :  { %p549_p5 = pnand %p547_p4, %p544_p3 }
 0x238   :  { %552 = shalt.err (!%p549_p5)
}
 0x239   :  { %322 = dma.vmem_to_hbm [thread:$0]  %s317_s3, 256, %s704_s5, [#allocation5], %s563_s30, %s563_s30, %s564_s6  }
 0x23a   :  { %559 = dma.done.wait [#allocation5], 256  }
 0x23b   :  { %560 = vsyncadd [#allocation5], 4294967040 }
 0x23c   :  { %326 = vsyncpa [#allocation4], 1 }
 0x23d   :  { %327 = vsyncpa [#allocation7], 1 }
 0x23e   :  { %328 = vsyncpa [#allocation10], 1 }
 0x23f   :  { %329 = vsyncpa [#allocation5], 1 }

</bundles_post_ra>
